<compile_context>
chip_gen: v6e
topology: v6e:2x2x1
jax: 0.10.0
libtpu: 0.0.40
codegen_flags: <defaults>
</compile_context>

<pallas_src>
import math

import jax
import jax.numpy as jnp
from jax.experimental import pallas as pl
from jax.experimental.pallas import tpu as pltpu


def _layernorm_f32(x_ref, gamma_ref, beta_ref):
    """LayerNorm over the last axis in f32 (torch.nn.LayerNorm eps=1e-5)."""
    x = x_ref[...].astype(jnp.float32)
    mean = jnp.mean(x, axis=-1, keepdims=True)
    centered = x - mean
    var = jnp.mean(centered * centered, axis=-1, keepdims=True)
    inv_std = jax.lax.rsqrt(var + 1e-5)
    # Fold gamma into the scale: y = centered * (inv_std * gamma) + beta
    scale = inv_std * gamma_ref[...].astype(jnp.float32)
    return centered * scale + beta_ref[...].astype(jnp.float32)


def _prenorm_kernel_multi_h(x_ref, gamma_ref, beta_ref, w_ref, bias_ref, o_ref, y_ref):
    # x_ref:     (TILE_ROWS, D)
    # gamma_ref: (1, D)          beta_ref: (1, D)
    # w_ref:     (D, TILE_H)     -- native dtype (bf16 fast path on the MXU)
    # bias_ref:  (1, TILE_H)
    # o_ref:     (TILE_ROWS, TILE_H)
    # y_ref:     (TILE_ROWS, D)  -- VMEM scratch holding LayerNorm(x) row tile
    #
    # Hidden axis (grid axis 1) is innermost: LayerNorm this row tile once
    # (j == 0), store it, and reuse it for every hidden tile.
    @pl.when(pl.program_id(1) == 0)
    def _():
        y_ref[...] = _layernorm_f32(x_ref, gamma_ref, beta_ref).astype(y_ref.dtype)

    out = jnp.dot(y_ref[...], w_ref[...], preferred_element_type=jnp.float32)
    o_ref[...] = (out + bias_ref[...].astype(jnp.float32)).astype(o_ref.dtype)


def _prenorm_kernel_single_h(x_ref, gamma_ref, beta_ref, w_ref, bias_ref, o_ref):
    # Single hidden tile: no scratch round-trip, LN result goes straight to MXU.
    y = _layernorm_f32(x_ref, gamma_ref, beta_ref).astype(w_ref.dtype)
    out = jnp.dot(y, w_ref[...], preferred_element_type=jnp.float32)
    o_ref[...] = (out + bias_ref[...].astype(jnp.float32)).astype(o_ref.dtype)


def _round_up(a, b):
    return -(-a // b) * b


def prenorm_linear(x, gamma, beta, w, bias, *, tile_rows=1024, tile_h=512):
    """LayerNorm over the last dim of x, then x @ w + bias.  x: (..., D)."""
    *lead, D = x.shape
    assert w.shape[0] == D
    H = w.shape[1]
    n_rows = math.prod(lead) if lead else 1
    x2 = x.reshape(n_rows, D)

    x_item = jnp.dtype(x.dtype).itemsize
    w_item = jnp.dtype(w.dtype).itemsize
    # Sublane packing multiple: 8 for f32, 16 for bf16, 32 for 1-byte dtypes.
    sub = max(8, 32 // min(x_item, w_item))

    # Row (MXU LHS) tile: big to amortize per-grid-step overhead, but never
    # bigger than the padded row count.
    tile_rows = max(sub, min(_round_up(tile_rows, sub), _round_up(n_rows, sub)))

    # Hidden (lane) tile: multiple of 128 for unmasked vector stores.
    h_pad = _round_up(H, 128)
    tile_h = max(128, min(_round_up(tile_h, 128), h_pad))

    # Shrink tiles until the working set fits a ~40 MiB VMEM budget
    # (re-derived for v7x's 64 MiB physical VMEM; ample on v5e/v6e).
    def vmem_est(tr, th):
        b = 2 * tr * D * x_item                 # x tile (double-buffered)
        b += 2 * tr * th * x_item               # out tile (double-buffered)
        b += 2 * D * th * w_item                # weight tile (double-buffered)
        b += tr * D * w_item                    # LN scratch
        b += 2 * (2 * D + th) * 4               # gamma / beta / bias
        b += 3 * tr * D * 4 + tr * th * 4       # headroom for f32 temporaries
        return b

    budget = 40 * 1024 * 1024
    while tile_rows > sub and vmem_est(tile_rows, tile_h) > budget:
        tile_rows = max(sub, _round_up(tile_rows // 2, sub))
    while tile_h > 128 and vmem_est(tile_rows, tile_h) > budget:
        tile_h -= 128

    rows_pad = _round_up(n_rows, tile_rows)
    h_pad = _round_up(h_pad, tile_h)

    # Pad remainder rows / hidden columns (padded outputs are sliced off).
    if rows_pad != n_rows:
        x2 = jnp.pad(x2, ((0, rows_pad - n_rows), (0, 0)))
    w2 = w if h_pad == H else jnp.pad(w, ((0, 0), (0, h_pad - H)))
    b2 = bias if h_pad == H else jnp.pad(bias, (0, h_pad - H))

    gamma2 = gamma.reshape(1, D)
    beta2 = beta.reshape(1, D)
    bias2 = b2.reshape(1, h_pad)

    n_h_tiles = h_pad // tile_h
    grid = (rows_pad // tile_rows, n_h_tiles)

    if n_h_tiles == 1:
        kernel = _prenorm_kernel_single_h
        scratch_shapes = []
    else:
        kernel = _prenorm_kernel_multi_h
        # LayerNorm(x) row tile, stored in the MXU input dtype (e.g. bf16).
        scratch_shapes = [pltpu.VMEM((tile_rows, D), w.dtype)]

    out2 = pl.pallas_call(
        kernel,
        out_shape=jax.ShapeDtypeStruct((rows_pad, h_pad), x.dtype),
        grid_spec=pltpu.PrefetchScalarGridSpec(
            num_scalar_prefetch=0,
            grid=grid,
            in_specs=[
                pl.BlockSpec((tile_rows, D), lambda i, j: (i, 0)),  # x rows
                pl.BlockSpec((1, D), lambda i, j: (0, 0)),          # gamma
                pl.BlockSpec((1, D), lambda i, j: (0, 0)),          # beta
                pl.BlockSpec((D, tile_h), lambda i, j: (0, j)),     # W tile
                pl.BlockSpec((1, tile_h), lambda i, j: (0, j)),     # bias tile
            ],
            out_specs=pl.BlockSpec((tile_rows, tile_h), lambda i, j: (i, j)),
            scratch_shapes=scratch_shapes,
        ),
        compiler_params=pltpu.CompilerParams(
            # Row axis "parallel" -> shards across v7x's 2 TensorCores (no-op
            # on v5e/v6e).  Hidden axis must be "arbitrary": the LN scratch
            # written at j == 0 is reused for j > 0 of the same row tile.
            dimension_semantics=("parallel", "arbitrary"),
            vmem_limit_bytes=48 * 1024 * 1024,
        ),
    )(x2, gamma2, beta2, w2, bias2)

    return out2[:n_rows, :H].reshape(*lead, H)


def prenorm_linear_ref(x, gamma, beta, w, bias):
    x = x.astype(jnp.float32)
    mean = jnp.mean(x, axis=-1, keepdims=True)
    var = jnp.mean((x - mean) ** 2, axis=-1, keepdims=True)
    xn = (x - mean) * jax.lax.rsqrt(var + 1e-5)
    y = xn * gamma + beta
    return jnp.einsum("...d,dh->...h", y, w.astype(jnp.float32),
                      precision=jax.lax.Precision.HIGHEST) + bias


if __name__ == "__main__":
    key = jax.random.PRNGKey(0)
    kx, kw, kg, kb, kw2 = jax.random.split(key, 5)

    # Small shapes echoing the rawmixer usage: arbitrary leading dims,
    # LayerNorm over the last ("dim") axis; fn = Linear(dim -> hidden).
    # Deliberately awkward sizes exercise the row-remainder and H-padding paths.
    B, C, S, D = 2, 1, 7, 125
    H = 96

    x = jax.random.normal(kx, (B, C, S, D), dtype=jnp.float32)
    gamma = jnp.ones((D,), jnp.float32) + 0.1 * jax.random.normal(kg, (D,), dtype=jnp.float32)
    beta = 0.1 * jax.random.normal(kb, (D,), dtype=jnp.float32)
    w = jax.random.normal(kw, (D, H), dtype=jnp.float32) * 0.02
    bias = 0.01 * jnp.ones((H,), jnp.float32)

    # f32 path (single hidden tile -> no-scratch fast path)
    out = jax.block_until_ready(prenorm_linear(x, gamma, beta, w, bias))
    ref = prenorm_linear_ref(x, gamma, beta, w, bias)
    assert out.shape == (B, C, S, H)
    assert jnp.allclose(out, ref, atol=5e-4, rtol=5e-4), float(jnp.max(jnp.abs(out - ref)))

    # bf16 fast path (MXU fed bf16 directly, f32 accumulate)
    xb = x.astype(jnp.bfloat16)
    wb = w.astype(jnp.bfloat16)
    outb = jax.block_until_ready(prenorm_linear(xb, gamma, beta, wb, bias))
    refb = prenorm_linear_ref(xb.astype(jnp.float32), gamma, beta,
                              wb.astype(jnp.float32), bias)
    assert outb.shape == (B, C, S, H)
    assert jnp.allclose(outb.astype(jnp.float32), refb, atol=2e-2, rtol=2e-2)

    # Multi-hidden-tile path (forces tile_h < H so the LN scratch is reused
    # across hidden tiles of the same row tile).
    H2 = 320
    w2 = jax.random.normal(kw2, (D, H2), dtype=jnp.float32) * 0.02
    bias2 = 0.01 * jnp.ones((H2,), jnp.float32)
    out2 = jax.block_until_ready(
        prenorm_linear(x, gamma, beta, w2, bias2, tile_h=128))
    ref2 = prenorm_linear_ref(x, gamma, beta, w2, bias2)
    assert out2.shape == (B, C, S, H2)
    assert jnp.allclose(out2, ref2, atol=5e-4, rtol=5e-4), float(jnp.max(jnp.abs(out2 - ref2)))

    print("KERNEL_OK")
</pallas_src>

<mosaic_0001>
module attributes {stable_mosaic.version = 11 : i64} {
  func.func @_prenorm_kernel_single_h(%arg0: i32, %arg1: i32, %arg2: memref<16x125xf32, #tpu.memory_space<vmem>>, %arg3: memref<1x125xf32, #tpu.memory_space<vmem>>, %arg4: memref<1x125xf32, #tpu.memory_space<vmem>>, %arg5: memref<125x128xf32, #tpu.memory_space<vmem>>, %arg6: memref<1x128xf32, #tpu.memory_space<vmem>>, %arg7: memref<16x128xf32, #tpu.memory_space<vmem>>) attributes {dimension_semantics = [#tpu.dimension_semantics<parallel>, #tpu.dimension_semantics<arbitrary>], iteration_bounds = array<i64: 1, 1>, scalar_prefetch = 0 : i64, scratch_operands = 0 : i64, tpu.core_type = #tpu.core_type<tc>, window_params = [{transform_indices = @transform_0, window_bounds = array<i64: 16, 125>}, {pipeline_mode = #tpu.pipeline_mode<synchronous>, transform_indices = @transform_1, window_bounds = array<i64: 1, 125>}, {pipeline_mode = #tpu.pipeline_mode<synchronous>, transform_indices = @transform_2, window_bounds = array<i64: 1, 125>}, {transform_indices = @transform_3, window_bounds = array<i64: 125, 128>}, {transform_indices = @transform_4, window_bounds = array<i64: 1, 128>}, {transform_indices = @transform_5, window_bounds = array<i64: 16, 128>}]} {
    %c0 = arith.constant 0 : index
    %c0_0 = arith.constant 0 : index
    %0 = vector.load %arg2[%c0, %c0_0] : memref<16x125xf32, #tpu.memory_space<vmem>>, vector<16x125xf32>
    %cst = arith.constant dense<0.000000e+00> : vector<16xf32>
    %1 = vector.multi_reduction <add>, %0, %cst [1] : vector<16x125xf32> to vector<16xf32>
    %2 = vector.shape_cast %1 : vector<16xf32> to vector<16x1xf32>
    %cst_1 = arith.constant 1.250000e+02 : f32
    %3 = vector.broadcast %cst_1 : f32 to vector<16x1xf32>
    %4 = arith.divf %2, %3 : vector<16x1xf32>
    %5 = vector.broadcast %4 : vector<16x1xf32> to vector<16x125xf32>
    %6 = arith.subf %0, %5 : vector<16x125xf32>
    %7 = arith.mulf %6, %6 : vector<16x125xf32>
    %cst_2 = arith.constant dense<0.000000e+00> : vector<16xf32>
    %8 = vector.multi_reduction <add>, %7, %cst_2 [1] : vector<16x125xf32> to vector<16xf32>
    %9 = vector.shape_cast %8 : vector<16xf32> to vector<16x1xf32>
    %cst_3 = arith.constant 1.250000e+02 : f32
    %10 = vector.broadcast %cst_3 : f32 to vector<16x1xf32>
    %11 = arith.divf %9, %10 : vector<16x1xf32>
    %cst_4 = arith.constant 9.99999974E-6 : f32
    %12 = vector.broadcast %cst_4 : f32 to vector<16x1xf32>
    %13 = arith.addf %11, %12 : vector<16x1xf32>
    %14 = math.rsqrt %13 : vector<16x1xf32>
    %c0_5 = arith.constant 0 : index
    %c0_6 = arith.constant 0 : index
    %15 = vector.load %arg3[%c0_5, %c0_6] : memref<1x125xf32, #tpu.memory_space<vmem>>, vector<1x125xf32>
    %16 = vector.broadcast %14 : vector<16x1xf32> to vector<16x125xf32>
    %17 = vector.broadcast %15 : vector<1x125xf32> to vector<16x125xf32>
    %18 = arith.mulf %16, %17 : vector<16x125xf32>
    %19 = arith.mulf %6, %18 : vector<16x125xf32>
    %c0_7 = arith.constant 0 : index
    %c0_8 = arith.constant 0 : index
    %20 = vector.load %arg4[%c0_7, %c0_8] : memref<1x125xf32, #tpu.memory_space<vmem>>, vector<1x125xf32>
    %21 = vector.broadcast %20 : vector<1x125xf32> to vector<16x125xf32>
    %22 = arith.addf %19, %21 : vector<16x125xf32>
    %c0_9 = arith.constant 0 : index
    %c0_10 = arith.constant 0 : index
    %23 = vector.load %arg5[%c0_9, %c0_10] : memref<125x128xf32, #tpu.memory_space<vmem>>, vector<125x128xf32>
    %cst_11 = arith.constant dense<0.000000e+00> : vector<16x128xf32>
    %24 = tpu.matmul %22, %23, %cst_11 {dimension_numbers = #tpu.dot_dimension_numbers<[1], [0], [0], [1], [0, 0, 1, 1], [], []>} : vector<16x125xf32>, vector<125x128xf32>, vector<16x128xf32> -> vector<16x128xf32>
    %c0_12 = arith.constant 0 : index
    %c0_13 = arith.constant 0 : index
    %25 = vector.load %arg6[%c0_12, %c0_13] : memref<1x128xf32, #tpu.memory_space<vmem>>, vector<1x128xf32>
    %26 = vector.broadcast %25 : vector<1x128xf32> to vector<16x128xf32>
    %27 = arith.addf %24, %26 : vector<16x128xf32>
    %c0_14 = arith.constant 0 : index
    %c0_15 = arith.constant 0 : index
    %28 = vector.load %arg7[%c0_14, %c0_15] : memref<16x128xf32, #tpu.memory_space<vmem>>, vector<16x128xf32>
    tpu.vector_store %arg7[%c0_14, %c0_15], %27 {strides = array<i32>} : memref<16x128xf32, #tpu.memory_space<vmem>>, vector<16x128xf32>,
    return
  }
  func.func @transform_0(%arg0: i32, %arg1: i32) -> (i32, i32) {
    %c0_i32 = arith.constant 0 : i32
    %c0_i32_0 = arith.constant 0 : i32
    return %arg0, %c0_i32 : i32, i32
  }
  func.func @transform_1(%arg0: i32, %arg1: i32) -> (i32, i32) {
    %c0_i32 = arith.constant 0 : i32
    %c0_i32_0 = arith.constant 0 : i32
    %c0_i32_1 = arith.constant 0 : i32
    return %c0_i32, %c0_i32_0 : i32, i32
  }
  func.func @transform_2(%arg0: i32, %arg1: i32) -> (i32, i32) {
    %c0_i32 = arith.constant 0 : i32
    %c0_i32_0 = arith.constant 0 : i32
    %c0_i32_1 = arith.constant 0 : i32
    return %c0_i32, %c0_i32_0 : i32, i32
  }
  func.func @transform_3(%arg0: i32, %arg1: i32) -> (i32, i32) {
    %c0_i32 = arith.constant 0 : i32
    %c0_i32_0 = arith.constant 0 : i32
    return %c0_i32, %arg1 : i32, i32
  }
  func.func @transform_4(%arg0: i32, %arg1: i32) -> (i32, i32) {
    %c0_i32 = arith.constant 0 : i32
    %c0_i32_0 = arith.constant 0 : i32
    return %c0_i32, %arg1 : i32, i32
  }
  func.func @transform_5(%arg0: i32, %arg1: i32) -> (i32, i32) {
    %c0_i32 = arith.constant 0 : i32
    return %arg0, %arg1 : i32, i32
  }
}

</mosaic_0001>

<bundles_post_ra>
// kernel: tpu_custom_call.1
= control target key start
LH: loop header
LB: loop body
LE: loop exit
PB: predicated region body
PF: predicated region fallthrough
CT: control target
= control target key end

     0   :  { %10 = vsyncpa [#allocation3], 0  ;;  %s437_s0 = inlined_call_operand.hbm [shape: f32[16,125], index: 0, kind: input, shape index: {}]   ;;  %s438_s1 = inlined_call_operand.vmem [shape: f32[1,125], index: 1, kind: input, shape index: {}]   ;;  %s439_s2 = inlined_call_operand.vmem [shape: f32[1,125], index: 2, kind: input, shape index: {}]   ;;  %s440_s3 = inlined_call_operand.hbm [shape: f32[125,128], index: 3, kind: input, shape index: {}]   ;;  %s441_s4 = inlined_call_operand.vmem [shape: f32[1,128], index: 4, kind: input, shape index: {}]   ;;  %s442_s5 = inlined_call_operand.hbm [shape: f32[16,128], index: 5, kind: output, shape index: {}]  }
   0x1   :  { %11 = vsyncpa [#allocation6], 0 }
   0x2   :  { %12 = vsyncpa [#allocation4], 0  ;;  %s359_s18 = smov [#allocation2]  }
   0x3   :  { %s18_s19 = sshll.u32 %s359_s18, 4  ;;  %s19_s19 = int_to_ptr.vmem [resolvable:$true] %s18_s19 }
   0x4   :  { %s301_s20 = scalar_lea.vmem %s19_s19, 256  ;;  %p306_p1 = scmp.lt.s32.totalorder %s19_s19, %s19_s19 }
   0x5   :  { %p302_p0 = scmp.ne.s32.totalorder %s19_s19, %s301_s20  ;;  %p307_p2 = scmp.lt.s32.totalorder %s301_s20, %s301_s20 }
   0x7   :  { %p308_p3 = por %p307_p2, %p306_p1 }
   0x9   :  { %p309_p4 = pnand %p308_p3, %p302_p0 }
   0xb   :  { %312 = shalt.err (!%p309_p4)
}
   0xc   :  { %s360_s21 = smov 128   ;;  %s361_s22 = smov 8  }
   0xd   :  { %24 = dma.hbm_to_vmem [thread:$0]  %s437_s0, 256, %s19_s19, [#allocation3], %s360_s21, %s360_s21, %s361_s22  }
   0xe   :  { %s362_s25 = smov [#allocation5]  }
   0xf   :  { %s34_s26 = sshll.u32 %s362_s25, 4  ;;  %s35_s26 = int_to_ptr.vmem [resolvable:$true] %s34_s26 }
  0x10   :  { %s321_s27 = scalar_lea.vmem %s35_s26, 2048  ;;  %p326_p6 = scmp.lt.s32.totalorder %s35_s26, %s35_s26 }
  0x11   :  { %p322_p5 = scmp.ne.s32.totalorder %s35_s26, %s321_s27  ;;  %p327_p7 = scmp.lt.s32.totalorder %s321_s27, %s321_s27 }
  0x13   :  { %p328_p8 = por %p327_p7, %p326_p6 }
  0x15   :  { %p329_p9 = pnand %p328_p8, %p322_p5 }
  0x17   :  { %332 = shalt.err (!%p329_p9)
}
  0x18   :  { %40 = dma.hbm_to_vmem [thread:$0]  %s440_s3, 2048, %s35_s26, [#allocation6], %s360_s21, %s360_s21, %s361_s22  }
  0x19   :  { %353 = dma.done.wait [#allocation3], 256  }
  0x1a   :  { %354 = vsyncadd [#allocation3], 4294967040 }
  0x1b   :  { %355 = dma.done.wait [#allocation6], 2048  }
  0x1c   :  { %356 = vsyncadd [#allocation6], 4294965248  ;;  %vm51_vm0 = vcmask 1022976   ;;  %v49_v0 = vld [vmem:[#allocation2] sm:$0xff]  ;;  %v50_v1 = vld [vmem:[#allocation2 + $0x8] sm:$0xff]  ;;  %vm126_vm1 = vcmask 1044480  }
  0x1d   :  { %v52_v2 = vsel %vm51_vm0, %v49_v0, 0.0  ;;  %v55_v3 = vsel %vm51_vm0, %v50_v1, 0.0  ;;  %v112_v4 = vld [vmem:[#allocation5 + $0x78] sm:$0x1f]  ;;  %v111_v5 = vld [vmem:[#allocation5 + $0x70] sm:$0xff]  ;;  %v110_v16 = vld [vmem:[#allocation5 + $0x68] sm:$0xff] }
  0x1e   :  { %53 = vadd.xlane.f32.xlu0 %v52_v2  ;;  %249 = vmatprep.subr.msk.mxu0 %vm126_vm1, %v112_v4  ;;  %v109_v17 = vld [vmem:[#allocation5 + $0x60] sm:$0xff]  ;;  %v108_v18 = vld [vmem:[#allocation5 + $0x58] sm:$0xff]  ;;  %v107_v19 = vld [vmem:[#allocation5 + $0x50] sm:$0xff]  ;;  %s363_s8 = smov [#allocation7]  }
  0x1f   :  { %250 = vmatpush3.msk.msra.mxu0 %vm126_vm1, %v112_v4  ;;  %v106_v20 = vld [vmem:[#allocation5 + $0x48] sm:$0xff]  ;;  %v105_v21 = vld [vmem:[#allocation5 + $0x40] sm:$0xff]  ;;  %v104_v22 = vld [vmem:[#allocation5 + $0x38] sm:$0xff]  ;;  %s212_s9 = sshll.u32 %s363_s8, 4  ;;  %s213_s9 = int_to_ptr.vmem [resolvable:$true] %s212_s9 }
  0x20   :  { %251 = vmatprep.subr.mxu0 %v111_v5  ;;  %v103_v23 = vld [vmem:[#allocation5 + $0x30] sm:$0xff]  ;;  %v102_v24 = vld [vmem:[#allocation5 + $0x28] sm:$0xff]  ;;  %v101_v25 = vld [vmem:[#allocation5 + $0x20] sm:$0xff]  ;;  %p338_p11 = scmp.lt.s32.totalorder %s213_s9, %s213_s9 }
  0x21   :  { %252 = vmatpush3.msra.mxu0 %v111_v5  ;;  %v100_v26 = vld [vmem:[#allocation5 + $0x18] sm:$0xff]  ;;  %v99_v27 = vld [vmem:[#allocation5 + $0x10] sm:$0xff]  ;;  %v98_v28 = vld [vmem:[#allocation5 + $0x8] sm:$0xff] }
  0x22   :  { %56 = vadd.xlane.f32.xlu0 %v55_v3  ;;  %253 = vmatprep.subr.mxu0 %v110_v16  ;;  %v97_v29 = vld [vmem:[#allocation5] sm:$0xff]  ;;  %v225_v36 = vld [vmem:[%s438_s1] ss:$0 sm:$0xff] }
  0x23   :  { %254 = vmatpush3.msra.mxu0 %v110_v16  ;;  %v226_v39 = vld [vmem:[%s439_s2] ss:$0 sm:$0xff]  ;;  %s333_s2 = scalar_lea.vmem %s213_s9, 256 }
  0x24   :  { %255 = vmatprep.subr.mxu0 %v109_v17  ;;  %v227_v46 = vld [vmem:[%s441_s4] ss:$0 sm:$0xff]  ;;  %p334_p10 = scmp.ne.s32.totalorder %s213_s9, %s333_s2  ;;  %p339_p12 = scmp.lt.s32.totalorder %s333_s2, %s333_s2 }
  0x25   :  { %256 = vmatpush3.msra.mxu0 %v109_v17 }
  0x26   :  { %257 = vmatprep.subr.mxu0 %v108_v18  ;;  %p340_p13 = por %p339_p12, %p338_p11 }
  0x27   :  { %258 = vmatpush3.msra.mxu0 %v108_v18 }
  0x28   :  { %259 = vmatprep.subr.mxu0 %v107_v19  ;;  %p341_p0 = pnand %p340_p13, %p334_p10 }
  0x29   :  { %260 = vmatpush3.msra.mxu0 %v107_v19 }
  0x2a   :  { %261 = vmatprep.subr.mxu0 %v106_v20 }
  0x2b   :  { %262 = vmatpush3.msra.mxu0 %v106_v20 }
  0x2c   :  { %263 = vmatprep.subr.mxu0 %v105_v21 }
  0x2d   :  { %264 = vmatpush3.msra.mxu0 %v105_v21 }
  0x2e   :  { %265 = vmatprep.subr.mxu0 %v104_v22 }
  0x2f   :  { %266 = vmatpush3.msra.mxu0 %v104_v22 }
  0x30   :  { %267 = vmatprep.subr.mxu0 %v103_v23 }
  0x31   :  { %268 = vmatpush3.msra.mxu0 %v103_v23 }
  0x32   :  { %269 = vmatprep.subr.mxu0 %v102_v24 }
  0x33   :  { %270 = vmatpush3.msra.mxu0 %v102_v24 }
  0x34   :  { %271 = vmatprep.subr.mxu0 %v101_v25 }
  0x35   :  { %272 = vmatpush3.msra.mxu0 %v101_v25 }
  0x36   :  { %273 = vmatprep.subr.mxu0 %v100_v26 }
  0x37   :  { %274 = vmatpush3.msra.mxu0 %v100_v26 }
  0x38   :  { %275 = vmatprep.subr.mxu0 %v99_v27 }
  0x39   :  { %276 = vmatpush3.msra.mxu0 %v99_v27 }
  0x3a   :  { %277 = vmatprep.subr.mxu0 %v98_v28 }
  0x3b   :  { %278 = vmatpush3.msra.mxu0 %v98_v28 }
  0x3c   :  { %279 = vmatprep.subr.mxu0 %v97_v29 }
  0x3d   :  { %280 = vmatpush3.msra.mxu0 %v97_v29 }
  0xa7   :  { %v54_v6 = vpop.xlane.xlu0 %53 }
  0xa8   :  { %v59_v7 = vmul.f32 0.008, %v54_v6 }
  0xaa   :  { %v408_v8 = vsub.f32 %v49_v0, %v59_v7 }
  0xab   :  { %v57_v9 = vpop.xlane.xlu0 %56 }
  0xac   :  { %v60_v10 = vmul.f32 0.008, %v57_v9  ;;  %v63_v11 = vmul.f32 %v408_v8, %v408_v8 }
  0xae   :  { %v412_v12 = vsub.f32 %v50_v1, %v60_v10  ;;  %v65_v13 = vsel %vm51_vm0, %v63_v11, 0.0 }
  0xaf   :  { %66 = vadd.xlane.f32.xlu1 %v65_v13 }
  0xb0   :  { %v64_v14 = vmul.f32 %v412_v12, %v412_v12 }
  0xb2   :  { %v68_v15 = vsel %vm51_vm0, %v64_v14, 0.0 }
  0xb3   :  { %69 = vadd.xlane.f32.xlu1 %v68_v15 }
 0x138   :  { %v67_v30 = vpop.xlane.xlu1 %66 }
 0x139   :  { %v71_v31 = vmul.f32 0.008, %v67_v30 }
 0x13b   :  { %v73_v32 = vadd.f32 1e-05, %v71_v31 }
 0x13c   :  { %v70_v33 = vpop.xlane.xlu1 %69 }
 0x13d   :  { %289 = vrsqrt.f32 %v73_v32  ;;  %v72_v34 = vmul.f32 0.008, %v70_v33 }
 0x13f   :  { %v74_v35 = vadd.f32 1e-05, %v72_v34 }
 0x141   :  { %291 = vrsqrt.f32 %v74_v35 }
 0x14a   :  { %v290_v37 = vpop.eup %289 }
 0x14b   :  { %v84_v38 = vmul.f32 %v290_v37, %v225_v36 }
 0x14d   :  { %v86_v40 = vmul.f32 %v84_v38, %v408_v8 }
 0x14e   :  { %v292_v41 = vpop.eup %291 }
 0x14f   :  { %v85_v42 = vmul.f32 %v292_v41, %v225_v36  ;;  %v95_v43 = vadd.f32 %v226_v39, %v86_v40 }
 0x151   :  { %v87_v44 = vmul.f32 %v85_v42, %v412_v12  ;;  %281 = vmatprep.mubr.msk.f32.mxu0 %vm51_vm0, %v95_v43 }
 0x153   :  { %v96_v45 = vadd.f32 %v226_v39, %v87_v44 }
 0x155   :  { %282 = vmatmul.mubr.msk.f32.vlgmr.msra.gmra.mxu0 %vm51_vm0, %v96_v45 }
 0x215   :  { %v283_v47 = vpop.f32.mrf.mxu0 }
 0x216   :  { %v202_v48 = vadd.f32 %v283_v47, %v227_v46 }
 0x217   :  { %v196_v49 = vpop.f32.mrf.mxu0 }
 0x218   :  { %206 = vst [vmem:[#allocation7 + $0x8] sm:$0xff] %v202_v48  ;;  %v197_v50 = vadd.f32 %v227_v46, %v196_v49 }
 0x21a   :  { %205 = vst [vmem:[#allocation7] sm:$0xff] %v197_v50 }
 0x21b   :  { %344 = shalt.err (!%p341_p0)
}
 0x21c   :  { %218 = dma.vmem_to_hbm [thread:$0]  %s213_s9, 256, %s442_s5, [#allocation4], %s360_s21, %s360_s21, %s361_s22  }
 0x21d   :  { %357 = dma.done.wait [#allocation4], 256  }
 0x21e   :  { %358 = vsyncadd [#allocation4], 4294967040 }
 0x21f   :  { %222 = vsyncpa [#allocation3], 1 }
 0x220   :  { %223 = vsyncpa [#allocation6], 1 }
 0x221   :  { %224 = vsyncpa [#allocation4], 1 }

</bundles_post_ra>
